<compile_context>
chip_gen: v6e
topology: v6e:2x2x1
jax: 0.10.0
libtpu: 0.0.40
codegen_flags: <defaults>
</compile_context>

<pallas_src>
import jax
import jax.numpy as jnp
from jax import lax
from jax.experimental import pallas as pl
from jax.experimental.pallas import tpu as pltpu


def _round_up(x, m):
    return ((x + m - 1) // m) * m


def _pad2_bytes(rows, cols, itemsize=4):
    """Bytes a 2-D f32 VMEM buffer occupies after (8, 128) layout tiling."""
    return _round_up(max(int(rows), 1), 8) * _round_up(max(int(cols), 1), 128) * itemsize


def _tpu_generation_params():
    """Return (tensorcores_per_chip, vmem_budget_bytes, vmem_limit_cap_bytes)."""
    kind = ""
    try:
        dev = jax.devices()[0]
        if dev.platform == "tpu":
            kind = (getattr(dev, "device_kind", "") or "").lower()
    except Exception:
        pass
    if "v5p" in kind:                       # 2 TensorCores, 128 MiB VMEM
        return 2, 56 << 20, 96 << 20
    if "v5" in kind or "v6" in kind:        # v5e / v6e: 1 TC, 128 MiB VMEM
        return 1, 56 << 20, 96 << 20
    # v7x (2 TCs, 64 MiB VMEM per core) and unknown chips: conservative.
    return 2, 28 << 20, 44 << 20


def _pack_params(weights, biases):
    """Pack all layer weights + biases into one [R, C] f32 array.

    Layer i occupies rows [roff_i, roff_i + d_out_i):
      cols [0, d_in_i) = W_i (torch [d_out, d_in] layout);  col C-1 = b_i.
    Row offsets are rounded to multiples of 8 so in-kernel slices stay
    sublane-aligned.  Returns (packed, [(roff, d_out, d_in), ...]).
    """
    max_in = max(int(w.shape[1]) for w in weights)
    C = max_in + 1
    blocks, meta, roff = [], [], 0
    for w, b in zip(weights, biases):
        d_out, d_in = int(w.shape[0]), int(w.shape[1])
        rows = _round_up(d_out, 8)
        blk = jnp.zeros((rows, C), jnp.float32)
        blk = blk.at[:d_out, :d_in].set(w.astype(jnp.float32))
        blk = blk.at[:d_out, C - 1].set(b.reshape(-1).astype(jnp.float32))
        blocks.append(blk)
        meta.append((roff, d_out, d_in))
        roff += rows
    return jnp.concatenate(blocks, axis=0), meta


def _make_mlp_kernel(layer_meta, bias_col):
    """Kernel body: lane-dense activations, batch-major output block."""
    n_layers = len(layer_meta)

    def kernel(x_ref, p_ref, o_ref):
        # Layer 0:  h = W0 @ x^T + b0  -> [hid0, tile]  (lane-dense).
        # Contracting the shared in_dim axis (A @ B^T form) avoids an explicit
        # transpose of the natural-layout x tile.
        roff, d_out, d_in = layer_meta[0]
        w = p_ref[roff:roff + d_out, 0:d_in]
        b = p_ref[roff:roff + d_out, bias_col:bias_col + 1]
        h = lax.dot_general(
            w, x_ref[...],
            dimension_numbers=(((1,), (1,)), ((), ())),
            preferred_element_type=jnp.float32,
        ) + b

        for li in range(1, n_layers):
            roff, d_out, d_in = layer_meta[li]
            w = p_ref[roff:roff + d_out, 0:d_in]
            b = p_ref[roff:roff + d_out, bias_col:bias_col + 1]
            # tanh before every Linear except the first and the last one,
            # exactly as in MLP.forward.
            if li < n_layers - 1:
                h = jnp.tanh(h)
            h = jnp.dot(w, h, preferred_element_type=jnp.float32) + b

        # Batch-major store: tiny [out_dim, tile] -> [tile, out_dim] transpose
        # on the otherwise-idle XLU; no wrapper-side transpose pass over y.
        o_ref[...] = h.T.astype(o_ref.dtype)

    return kernel


_TILE_CAP = 8192  # amortize ~0.35us/step overhead; still VMEM-checked below


def _choose_batch_tile(B, in_dim, out_dim, max_feat, packed_shape,
                       requested, num_tc, vmem_budget):
    """Pick a large batch tile that fits the VMEM budget, keeping
    grid >= 2 * num_tensorcores when the batch allows it."""
    R, C = packed_shape

    def est(t):
        return (2 * _pad2_bytes(t, in_dim)       # x blocks (double-buffered, lane-padded)
                + 3 * _pad2_bytes(t, out_dim)    # y blocks (db) + transposed temp
                + 2 * _pad2_bytes(R, C)          # packed params (db)
                + 3 * _pad2_bytes(max_feat, t))  # live lane-dense activations

    if requested is not None:
        tile = _round_up(max(8, int(requested)), 8)
    else:
        target_grid = max(2, 2 * num_tc)         # >= 2 steps per TensorCore
        tile = _round_up(pl.cdiv(B, target_grid), 8) if B > 8 else _round_up(B, 8)
        tile = min(_TILE_CAP, tile)
    tile = max(8, min(tile, _round_up(B, 8)))
    while tile > 8 and est(tile) > vmem_budget:
        tile = _round_up(tile // 2, 8)
    return tile, est(tile)


def mlp_pallas(x, weights, biases, *, batch_tile=None):
    """Run the MLP forward.

    x:       [B, in_dim]            float32
    weights: list of [d_out, d_in]  float32 (torch nn.Linear layout)
    biases:  list of [d_out, 1]     float32
    returns: [B, out_dim]
    """
    assert len(weights) == len(biases) and len(weights) >= 1
    B, in_dim = x.shape
    out_dim = int(weights[-1].shape[0])
    max_feat = max(int(w.shape[0]) for w in weights)

    num_tc, vmem_budget, vmem_cap = _tpu_generation_params()
    packed, layer_meta = _pack_params(weights, biases)
    bias_col = int(packed.shape[1]) - 1

    tile, est_bytes = _choose_batch_tile(
        B, in_dim, out_dim, max_feat, packed.shape, batch_tile, num_tc, vmem_budget)

    # No batch padding: boundary blocks are bounded/masked by Pallas, and all
    # contractions are over feature axes so partial-tile garbage cannot leak
    # into valid batch rows.
    grid = (pl.cdiv(B, tile),)
    kernel = _make_mlp_kernel(layer_meta, bias_col)
    vmem_limit = int(min(vmem_cap, max(2 * est_bytes, 20 << 20)))

    return pl.pallas_call(
        kernel,
        out_shape=jax.ShapeDtypeStruct((B, out_dim), x.dtype),
        grid=grid,
        in_specs=[
            pl.BlockSpec((tile, in_dim), lambda i: (i, 0)),   # natural x layout: one HBM pass
            pl.BlockSpec(tuple(packed.shape), lambda i: (0, 0)),  # all params: one constant block
        ],
        out_specs=pl.BlockSpec((tile, out_dim), lambda i: (i, 0)),  # batch-major, no wrapper transpose
        compiler_params=pltpu.CompilerParams(
            dimension_semantics=("parallel",),
            vmem_limit_bytes=vmem_limit,
        ),
    )(x, packed)


def mlp_reference(x, weights, biases):
    """Pure-JAX reference with identical semantics (for verification)."""
    n_layers = len(weights)
    h = x
    for li, (w, b) in enumerate(zip(weights, biases)):
        if 0 < li < n_layers - 1:
            h = jnp.tanh(h)
        h = h @ w.T + b[:, 0]
    return h


def init_mlp_params(key, in_dim, hid_dim, out_dim, n_hidden):
    """Deterministic init mimicking torch.nn.Linear's default U(-1/sqrt(fan_in), +)."""
    if isinstance(hid_dim, int):
        hid_dim = [hid_dim] * n_hidden
    dims = [in_dim] + hid_dim + [out_dim]
    weights, biases = [], []
    for li in range(len(dims) - 1):
        d_in, d_out = dims[li], dims[li + 1]
        key, kw, kb = jax.random.split(key, 3)
        bound = 1.0 / (d_in ** 0.5)
        weights.append(jax.random.uniform(kw, (d_out, d_in), jnp.float32, -bound, bound))
        biases.append(jax.random.uniform(kb, (d_out, 1), jnp.float32, -bound, bound))
    return weights, biases


# TODO(synk): use_resnet=True, normalization_factory, and flatten(t, x) paths are
# not exercised by the default MLP config; the kernel covers the default forward.

if __name__ == "__main__":
    # Module-consistent small shapes; B=500 exercises the masked boundary block.
    B, IN_DIM, HID_DIM, OUT_DIM, N_HIDDEN = 500, 8, 32, 4, 3

    key = jax.random.PRNGKey(0)
    key, kx = jax.random.split(key)
    x = jax.random.normal(kx, (B, IN_DIM), dtype=jnp.float32)

    weights, biases = init_mlp_params(key, IN_DIM, HID_DIM, OUT_DIM, N_HIDDEN)

    y = mlp_pallas(x, weights, biases)
    y = jax.block_until_ready(y)

    y_ref = mlp_reference(x, weights, biases)
    assert y.shape == (B, OUT_DIM)
    assert jnp.allclose(y, y_ref, atol=1e-4, rtol=1e-4), "mismatch vs reference"

    print("KERNEL_OK")
</pallas_src>

<mosaic_0001>
module attributes {stable_mosaic.version = 11 : i64} {
  func.func @kernel(%arg0: i32, %arg1: memref<128x8xf32, #tpu.memory_space<vmem>>, %arg2: memref<104x33xf32, #tpu.memory_space<vmem>>, %arg3: memref<128x4xf32, #tpu.memory_space<vmem>>) attributes {dimension_semantics = [#tpu.dimension_semantics<parallel>], iteration_bounds = array<i64: 4>, scalar_prefetch = 0 : i64, scratch_operands = 0 : i64, tpu.core_type = #tpu.core_type<tc>, window_params = [{transform_indices = @transform_0, window_bounds = array<i64: 128, 8>}, {pipeline_mode = #tpu.pipeline_mode<synchronous>, transform_indices = @transform_1, window_bounds = array<i64: 104, 33>}, {transform_indices = @transform_2, window_bounds = array<i64: 128, 4>}]} {
    %c0 = arith.constant 0 : index
    %c0_0 = arith.constant 0 : index
    %0 = vector.load %arg2[%c0, %c0_0] : memref<104x33xf32, #tpu.memory_space<vmem>>, vector<32x8xf32>
    %c0_1 = arith.constant 0 : index
    %c32 = arith.constant 32 : index
    %1 = vector.load %arg2[%c0_1, %c32] : memref<104x33xf32, #tpu.memory_space<vmem>>, vector<32x1xf32>
    %c0_2 = arith.constant 0 : index
    %c0_3 = arith.constant 0 : index
    %2 = vector.load %arg1[%c0_2, %c0_3] : memref<128x8xf32, #tpu.memory_space<vmem>>, vector<128x8xf32>
    %cst = arith.constant dense<0.000000e+00> : vector<32x128xf32>
    %3 = tpu.matmul %0, %2, %cst {dimension_numbers = #tpu.dot_dimension_numbers<[1], [1], [0], [0], [0, 0, 1, 0], [], []>} : vector<32x8xf32>, vector<128x8xf32>, vector<32x128xf32> -> vector<32x128xf32>
    %4 = vector.broadcast %1 : vector<32x1xf32> to vector<32x128xf32>
    %5 = arith.addf %3, %4 : vector<32x128xf32>
    %c32_4 = arith.constant 32 : index
    %c0_5 = arith.constant 0 : index
    %6 = vector.load %arg2[%c32_4, %c0_5] : memref<104x33xf32, #tpu.memory_space<vmem>>, vector<32x32xf32>
    %c32_6 = arith.constant 32 : index
    %c32_7 = arith.constant 32 : index
    %7 = vector.load %arg2[%c32_6, %c32_7] : memref<104x33xf32, #tpu.memory_space<vmem>>, vector<32x1xf32>
    %8 = math.tanh %5 : vector<32x128xf32>
    %cst_8 = arith.constant dense<0.000000e+00> : vector<32x128xf32>
    %9 = tpu.matmul %6, %8, %cst_8 {dimension_numbers = #tpu.dot_dimension_numbers<[1], [0], [0], [1], [0, 0, 1, 1], [], []>} : vector<32x32xf32>, vector<32x128xf32>, vector<32x128xf32> -> vector<32x128xf32>
    %10 = vector.broadcast %7 : vector<32x1xf32> to vector<32x128xf32>
    %11 = arith.addf %9, %10 : vector<32x128xf32>
    %c64 = arith.constant 64 : index
    %c0_9 = arith.constant 0 : index
    %12 = vector.load %arg2[%c64, %c0_9] : memref<104x33xf32, #tpu.memory_space<vmem>>, vector<32x32xf32>
    %c64_10 = arith.constant 64 : index
    %c32_11 = arith.constant 32 : index
    %13 = vector.load %arg2[%c64_10, %c32_11] : memref<104x33xf32, #tpu.memory_space<vmem>>, vector<32x1xf32>
    %14 = math.tanh %11 : vector<32x128xf32>
    %cst_12 = arith.constant dense<0.000000e+00> : vector<32x128xf32>
    %15 = tpu.matmul %12, %14, %cst_12 {dimension_numbers = #tpu.dot_dimension_numbers<[1], [0], [0], [1], [0, 0, 1, 1], [], []>} : vector<32x32xf32>, vector<32x128xf32>, vector<32x128xf32> -> vector<32x128xf32>
    %16 = vector.broadcast %13 : vector<32x1xf32> to vector<32x128xf32>
    %17 = arith.addf %15, %16 : vector<32x128xf32>
    %c96 = arith.constant 96 : index
    %c0_13 = arith.constant 0 : index
    %18 = vector.load %arg2[%c96, %c0_13] : memref<104x33xf32, #tpu.memory_space<vmem>>, vector<4x32xf32>
    %c96_14 = arith.constant 96 : index
    %c32_15 = arith.constant 32 : index
    %19 = vector.load %arg2[%c96_14, %c32_15] : memref<104x33xf32, #tpu.memory_space<vmem>>, vector<4x1xf32>
    %cst_16 = arith.constant dense<0.000000e+00> : vector<4x128xf32>
    %20 = tpu.matmul %18, %17, %cst_16 {dimension_numbers = #tpu.dot_dimension_numbers<[1], [0], [0], [1], [0, 0, 1, 1], [], []>} : vector<4x32xf32>, vector<32x128xf32>, vector<4x128xf32> -> vector<4x128xf32>
    %21 = vector.broadcast %19 : vector<4x1xf32> to vector<4x128xf32>
    %22 = arith.addf %20, %21 : vector<4x128xf32>
    %23 = tpu.transpose %22, [1, 0] : vector<4x128xf32> -> vector<128x4xf32>
    %c0_17 = arith.constant 0 : index
    %c0_18 = arith.constant 0 : index
    %24 = vector.load %arg3[%c0_17, %c0_18] : memref<128x4xf32, #tpu.memory_space<vmem>>, vector<128x4xf32>
    tpu.vector_store %arg3[%c0_17, %c0_18], %23 {strides = array<i32>} : memref<128x4xf32, #tpu.memory_space<vmem>>, vector<128x4xf32>,
    return
  }
  func.func @transform_0(%arg0: i32) -> (i32, i32) {
    %c0_i32 = arith.constant 0 : i32
    %c0_i32_0 = arith.constant 0 : i32
    return %arg0, %c0_i32 : i32, i32
  }
  func.func @transform_1(%arg0: i32) -> (i32, i32) {
    %c0_i32 = arith.constant 0 : i32
    %c0_i32_0 = arith.constant 0 : i32
    %c0_i32_1 = arith.constant 0 : i32
    return %c0_i32, %c0_i32_0 : i32, i32
  }
  func.func @transform_2(%arg0: i32) -> (i32, i32) {
    %c0_i32 = arith.constant 0 : i32
    %c0_i32_0 = arith.constant 0 : i32
    return %arg0, %c0_i32 : i32, i32
  }
}

</mosaic_0001>

<bundles_post_ra>
// kernel: tpu_custom_call.1
= control target key start
LH: loop header
LB: loop body
LE: loop exit
PB: predicated region body
PF: predicated region fallthrough
CT: control target
= control target key end

     0   :  { %s1382_s9 = smov 0   ;;  %s1384_s10 = smov 0   ;;  %s1700_s0 = inlined_call_operand.vmem [shape: f32[500,8], index: 0, kind: input, shape index: {}]   ;;  %s1701_s1 = inlined_call_operand.vmem [shape: f32[104,33], index: 1, kind: input, shape index: {}]   ;;  %s1702_s2 = inlined_call_operand.vmem [shape: f32[500,4], index: 2, kind: output, shape index: {}]  }
   0x1   :  { %s1386_s11 = smov 0  }
   0x2 LB: > { %s1395_s12 = sadd.s32 4294967295, %s1330_s11   ;;  %s1397_s13 = sadd.s32 1, %s1330_s11   ;;  %s1330_s11 = sphi %s1386_s11, %s1709_s11   ;;  %s1326_s10 = sphi %s1384_s10, %s1708_s10   ;;  %s1322_s9 = sphi %s1382_s9, %s1707_s9  }
   0x3   : > { %s63_s14 = ssub.s32 %s1330_s11, %s1397_s13  ;;  %s66_s15 = sadd.s32 1, %s1326_s10 }
   0x4   : > { %p64_p0 = scmp.eq.s32.totalorder %s63_s14, 0  ;;  %p76_p1 = scmp.ne.s32.totalorder %s1326_s10, %s1322_s9 }
   0x5   : > { %p77_p2 = scmp.eq.s32.totalorder %s1395_s12, 3  ;;  %p996_p3 = scmp.ge.s32.totalorder %s1330_s11, 1 }
   0x6   : > { %s1405_s16 = scalar_select %p64_p0, %s1326_s10, %s66_s15  }
   0x7   : > { %p1407_p4 = por %p77_p2, %p76_p1  ;;  %p121_p5 = scmp.lt.s32.totalorder %s1330_s11, 5 }
   0x9   : > { %p122_p6 = pnand %p996_p3, %p121_p5 }
   0xa   : > { %s1412_s18 = sshll.u32 (!%p122_p6), %s1395_s12, 4  ;;  %s143_s29 = sand.u32 (!%p122_p6), 1, %s1322_s9  }
   0xb   : > { %125 = sbr.rel (%p122_p6) target bundleno = 1155 (0x483), region = 28  ;;  %p151_p7 = scmp.lt.s32.totalorder (!%p122_p6), %s1412_s18, 62 }
   0xc   : > { %s997_s30 = sshll.u32 (!%p122_p6), %s143_s29, 7 }
  0x10   : > { %vm205_vm0 = vcmask 64512   ;;  %v165_v0 = vld [vmem:[%s1701_s1] sm:$0xff]  ;;  %v1422_v1 = vld [vmem:[%s1701_s1 + $0x18] sm:$0xff]  ;;  %v1364_v2 = vmov 32   ;;  %v1427_v3 = vld [vmem:[%s1701_s1 + $0x8] sm:$0xff]  ;;  %s152_s25 = scalar_select %p151_p7, %s1412_s18, 62 }
  0x11   : > { %1122 = vmatprep.mubr.msk.f32.mxu0 %vm205_vm0, %v165_v0  ;;  %1258 = vset.pattern.permute.xlu0 %v1364_v2  ;;  %v1435_v4 = vld [vmem:[%s1701_s1 + $0x10] sm:$0xff]  ;;  %v1448_v7 = vld [vmem:[%s1701_s1 + $0x38] sm:$0xff]  ;;  %v1463_v10 = vld [vmem:[%s1701_s1 + $0x28] sm:$0xff]  ;;  %vm375_vm1 = vcmask 261120   ;;  %v1365_v62 = vmov 0.0   ;;  %vm1366_vm2 = vmmov 0  }
  0x12   : > { %202 = vperm.xlu0 %1258, %v1422_v1   ;;  %1259 = vset.pattern.permute.xlu1 %v1364_v2  ;;  %s999_s26 = sshll.u32 %s152_s25, 3  ;;  %v1454_v8 = vld [vmem:[%s1701_s1 + $0x30] sm:$0xff]  ;;  %v347_v11 = vld [vmem:[%s1701_s1 + $0x20] sm:$0xff]  ;;  %v1476_v13 = vld [vmem:[%s1701_s1 + $0x58] sm:$0xff]  ;;  %vm700_vm3 = vcmask 31744   ;;  %s725_s9 = ssub.s32 (%p1407_p4), 63, %s1412_s18 }
  0x13   : > { %192 = vperm.xlu1 %1259, %v1427_v3   ;;  %s1440_s3 = scalar_lea.vmem %s1700_s0, %s999_s26  ;;  %v1481_v14 = vld [vmem:[%s1701_s1 + $0x50] sm:$0xff]  ;;  %v1490_v16 = vld [vmem:[%s1701_s1 + $0x48] sm:$0xff]  ;;  %v1496_v17 = vld [vmem:[%s1701_s1 + $0x40] sm:$0xff]  ;;  %1136 = vmatprep.mubr.msk.f32.mxu1 %vm375_vm1, %v347_v11  ;;  %s1046_s4 = sshll.u32 (%p1407_p4), %s1395_s12, 7 }
  0x14   : > { %v184_v5 = vld [vmem:[%s1440_s3 + $0x78] sm:$0xff]  ;;  %v183_v6 = vld [vmem:[%s1440_s3 + $0x70] sm:$0xff]  ;;  %v182_v9 = vld [vmem:[%s1440_s3 + $0x68] sm:$0xff]  ;;  %p726_p8 = scmp.lt.s32.totalorder (%p1407_p4), %s725_s9, 16  ;;  %s1607_s7 = scalar_lea.vmem (%p1407_p4), %s1702_s2, %s1046_s4  }
  0x15   : > { %1090 = vmatprep.subr.msk.mxu0 %vm205_vm0, %v184_v5  ;;  %v181_v12 = vld [vmem:[%s1440_s3 + $0x60] sm:$0xff]  ;;  %v180_v15 = vld [vmem:[%s1440_s3 + $0x58] sm:$0xff]  ;;  %v179_v18 = vld [vmem:[%s1440_s3 + $0x50] sm:$0xff] }
  0x16   : > { %197 = vperm.xlu0 %1258, %v1435_v4   ;;  %1091 = vmatpush3.xpose.msk.msra.mxu0 %vm205_vm0, %v184_v5  ;;  %v1505_v19 = vld [vmem:[%s1701_s1 + $0x60] sm:$0xf]  ;;  %v178_v20 = vld [vmem:[%s1440_s3 + $0x48] sm:$0xff]  ;;  %v176_v22 = vld [vmem:[%s1440_s3 + $0x38] sm:$0xff] }
  0x17   : > { %187 = vperm.xlu1 %1259, %v165_v0   ;;  %1092 = vmatprep.subr.msk.mxu0 %vm205_vm0, %v183_v6  ;;  %v177_v21 = vld [vmem:[%s1440_s3 + $0x40] sm:$0xff]  ;;  %v175_v23 = vld [vmem:[%s1440_s3 + $0x30] sm:$0xff]  ;;  %v174_v24 = vld [vmem:[%s1440_s3 + $0x28] sm:$0xff] }
  0x18   : > { %v173_v25 = vld [vmem:[%s1440_s3 + $0x20] sm:$0xff]  ;;  %v172_v26 = vld [vmem:[%s1440_s3 + $0x18] sm:$0xff]  ;;  %v171_v27 = vld [vmem:[%s1440_s3 + $0x10] sm:$0xff] }
  0x19   : > { %v170_v28 = vld [vmem:[%s1440_s3 + $0x8] sm:$0xff]  ;;  %v169_v29 = vld [vmem:[%s1440_s3] sm:$0xff]  ;;  %s1566_s3 = scalar_lea.vmem [#allocation2], %s997_s30  }
  0x1a   : > { %372 = vperm.xlu0 %1258, %v1448_v7   ;;  %1093 = vmatpush3.xpose.msk.msra.mxu0 %vm205_vm0, %v183_v6 }
  0x1b   : > { %367 = vperm.xlu1 %1259, %v1454_v8   ;;  %1094 = vmatprep.subr.msk.mxu0 %vm205_vm0, %v182_v9 }
  0x1e   : > { %362 = vperm.xlu0 %1258, %v1463_v10   ;;  %1095 = vmatpush3.xpose.msk.msra.mxu0 %vm205_vm0, %v182_v9 }
  0x1f   : > { %357 = vperm.xlu1 %1259, %v347_v11   ;;  %1096 = vmatprep.subr.msk.mxu0 %vm205_vm0, %v181_v12 }
  0x22   : > { %494 = vperm.xlu0 %1258, %v1476_v13   ;;  %1097 = vmatpush3.xpose.msk.msra.mxu0 %vm205_vm0, %v181_v12 }
  0x23   : > { %489 = vperm.xlu1 %1259, %v1481_v14   ;;  %1098 = vmatprep.subr.msk.mxu0 %vm205_vm0, %v180_v15 }
  0x26   : > { %484 = vperm.xlu0 %1258, %v1490_v16   ;;  %1099 = vmatpush3.xpose.msk.msra.mxu0 %vm205_vm0, %v180_v15 }
  0x27   : > { %479 = vperm.xlu1 %1259, %v1496_v17   ;;  %1100 = vmatprep.subr.msk.mxu0 %vm205_vm0, %v179_v18 }
  0x2a   : > { %593 = vperm.xlu0 %1258, %v1505_v19   ;;  %1101 = vmatpush3.xpose.msk.msra.mxu0 %vm205_vm0, %v179_v18 }
  0x2b   : > { %1102 = vmatprep.subr.msk.mxu0 %vm205_vm0, %v178_v20 }
  0x2e   : > { %1103 = vmatpush3.xpose.msk.msra.mxu0 %vm205_vm0, %v178_v20 }
  0x2f   : > { %1104 = vmatprep.subr.msk.mxu0 %vm205_vm0, %v177_v21 }
  0x32   : > { %1105 = vmatpush3.xpose.msk.msra.mxu0 %vm205_vm0, %v177_v21 }
  0x33   : > { %1106 = vmatprep.subr.msk.mxu0 %vm205_vm0, %v176_v22 }
  0x36   : > { %1107 = vmatpush3.xpose.msk.msra.mxu0 %vm205_vm0, %v176_v22 }
  0x37   : > { %1108 = vmatprep.subr.msk.mxu0 %vm205_vm0, %v175_v23 }
  0x3a   : > { %1109 = vmatpush3.xpose.msk.msra.mxu0 %vm205_vm0, %v175_v23 }
  0x3b   : > { %1110 = vmatprep.subr.msk.mxu0 %vm205_vm0, %v174_v24 }
  0x3e   : > { %1111 = vmatpush3.xpose.msk.msra.mxu0 %vm205_vm0, %v174_v24 }
  0x3f   : > { %1112 = vmatprep.subr.msk.mxu0 %vm205_vm0, %v173_v25 }
  0x42   : > { %1113 = vmatpush3.xpose.msk.msra.mxu0 %vm205_vm0, %v173_v25 }
  0x43   : > { %1114 = vmatprep.subr.msk.mxu0 %vm205_vm0, %v172_v26 }
  0x46   : > { %1115 = vmatpush3.xpose.msk.msra.mxu0 %vm205_vm0, %v172_v26 }
  0x47   : > { %1116 = vmatprep.subr.msk.mxu0 %vm205_vm0, %v171_v27 }
  0x4a   : > { %1117 = vmatpush3.xpose.msk.msra.mxu0 %vm205_vm0, %v171_v27 }
  0x4b   : > { %1118 = vmatprep.subr.msk.mxu0 %vm205_vm0, %v170_v28 }
  0x4e   : > { %1119 = vmatpush3.xpose.msk.msra.mxu0 %vm205_vm0, %v170_v28 }
  0x4f   : > { %1120 = vmatprep.subr.msk.mxu0 %vm205_vm0, %v169_v29 }
  0x52   : > { %1121 = vmatpush3.xpose.msk.msra.mxu0 %vm205_vm0, %v169_v29 }
  0x55   : > { %1123 = vmatmul.mubr.msk.f32.vlgmr.msra.gmra.mxu0 %vm205_vm0, %v1427_v3 }
  0x56   : > { %1125 = vmatprep.mubr.msk.f32.mxu0 %vm205_vm0, %v1435_v4 }
  0x59   : > { %1126 = vmatmul.mubr.msk.f32.gmra.mxu0 %vm205_vm0, %v1422_v1 }
  0x8d   : > { %v203_v30 = vpop.permute.xlu0 %202 }
  0x8e   : > { %v193_v32 = vpop.permute.xlu1 %192 }
  0x91   : > { %v198_v36 = vpop.permute.xlu0 %197 }
  0x92   : > { %v188_v40 = vpop.permute.xlu1 %187 }
  0x95   : > { %v373_v46 = vpop.permute.xlu0 %372 }
  0x96   : > { %v368_v48 = vpop.permute.xlu1 %367 }
  0x99   : > { %v363_v52 = vpop.permute.xlu0 %362 }
  0x9a   : > { %v358_v56 = vpop.permute.xlu1 %357 }
  0x9d   : > { %v495_v0 = vpop.permute.xlu0 %494 }
  0x9e   : > { %v490_v2 = vpop.permute.xlu1 %489 }
  0xa2   : > { %v480_v9 = vpop.permute.xlu1 %479 }
 0x115   : > { %v1124_v31 = vpop.f32.mrf.mxu0 }
 0x116   : > { %v334_v38 = vadd.f32 %v1124_v31, %v193_v32 }
 0x117   : > { %v328_v33 = vpop.f32.mrf.mxu0 }
 0x118   : > { %v329_v41 = vadd.f32 %v328_v33, %v188_v40 }
 0x119   : > { %v1127_v34 = vpop.f32.mrf.mxu0 }
 0x11a   : > { %v344_v35 = vadd.f32 %v1127_v34, %v203_v30 }
 0x11b   : > { %v338_v37 = vpop.f32.mrf.mxu0 }
 0x11c   : > { %1260 = vtanh.f32 %v344_v35  ;;  %v339_v39 = vadd.f32 %v338_v37, %v198_v36 }
 0x11e   : > { %1262 = vtanh.f32 %v339_v39 }
 0x11f   : > { %1264 = vtanh.f32 %v334_v38 }
 0x120   : > { %1266 = vtanh.f32 %v329_v41 }
 0x129   : > { %v1261_v42 = vpop.eup %1260 }
 0x12a   : > { %1128 = vmatprep.subr.mxu1 %v1261_v42 }
 0x12b   : > { %v1263_v43 = vpop.eup %1262  ;;  %1129 = vmatpush3.msra.mxu1 %v1261_v42 }
 0x12c   : > { %1130 = vmatprep.subr.mxu1 %v1263_v43  ;;  %v1265_v44 = vpop.eup %1264 }
 0x12d   : > { %1131 = vmatpush3.msra.mxu1 %v1263_v43  ;;  %v1267_v45 = vpop.eup %1266 }
 0x12e   : > { %1132 = vmatprep.subr.mxu1 %v1265_v44 }
 0x12f   : > { %1133 = vmatpush3.msra.mxu1 %v1265_v44 }
 0x130   : > { %1134 = vmatprep.subr.mxu1 %v1267_v45 }
 0x131   : > { %1135 = vmatpush3.msra.mxu1 %v1267_v45 }
 0x132   : > { %1137 = vmatmul.mubr.msk.f32.vlgmr.msra.gmra.mxu1 %vm375_vm1, %v1463_v10 }
 0x133   : > { %1139 = vmatprep.mubr.msk.f32.mxu1 %vm375_vm1, %v1454_v8 }
 0x136   : > { %1140 = vmatmul.mubr.msk.f32.gmra.mxu1 %vm375_vm1, %v1448_v7  ;;  %v485_v7 = vpop.permute.xlu0 %484 }
 0x137   : > { %1150 = vmatprep.mubr.msk.f32.mxu1 %vm375_vm1, %v1496_v17 }
 0x13a   : > { %v594_v11 = vpop.permute.xlu0 %593 }
 0x1f2   : > { %v1138_v47 = vpop.f32.mrf.mxu1 }
 0x1f3   : > { %v456_v54 = vadd.f32 %v1138_v47, %v363_v52 }
 0x1f4   : > { %v450_v49 = vpop.f32.mrf.mxu1 }
 0x1f5   : > { %v451_v57 = vadd.f32 %v450_v49, %v358_v56 }
 0x1f6   : > { %v1141_v50 = vpop.f32.mrf.mxu1 }
 0x1f7   : > { %v466_v51 = vadd.f32 %v1141_v50, %v373_v46 }
 0x1f8   : > { %v460_v53 = vpop.f32.mrf.mxu1 }
 0x1f9   : > { %1268 = vtanh.f32 %v466_v51  ;;  %v461_v55 = vadd.f32 %v460_v53, %v368_v48 }
 0x1fb   : > { %1270 = vtanh.f32 %v461_v55 }
 0x1fc   : > { %1272 = vtanh.f32 %v456_v54 }
 0x1fd   : > { %1274 = vtanh.f32 %v451_v57 }
 0x206   : > { %v1269_v58 = vpop.eup %1268 }
 0x207   : > { %1142 = vmatprep.subr.mxu1 %v1269_v58 }
 0x208   : > { %v1271_v59 = vpop.eup %1270  ;;  %1143 = vmatpush3.msra.mxu1 %v1269_v58 }
 0x209   : > { %1144 = vmatprep.subr.mxu1 %v1271_v59  ;;  %v1273_v60 = vpop.eup %1272 }
 0x20a   : > { %1145 = vmatpush3.msra.mxu1 %v1271_v59  ;;  %v1275_v61 = vpop.eup %1274 }
 0x20b   : > { %1146 = vmatprep.subr.mxu1 %v1273_v60 }
 0x20c   : > { %1147 = vmatpush3.msra.mxu1 %v1273_v60 }
 0x20d   : > { %1148 = vmatprep.subr.mxu1 %v1275_v61 }
 0x20e   : > { %1149 = vmatpush3.msra.mxu1 %v1275_v61 }
 0x20f   : > { %1151 = vmatmul.mubr.msk.f32.vlgmr.msra.gmra.mxu1 %vm375_vm1, %v1490_v16  ;;  %1156 = vmatprep.subr.mxu1 %v1365_v62 }
 0x210   : > { %1153 = vmatprep.mubr.msk.f32.mxu1 %vm375_vm1, %v1481_v14 }
 0x213   : > { %1154 = vmatmul.mubr.msk.f32.gmra.mxu1 %vm375_vm1, %v1476_v13 }
 0x214   : > { %1164 = vmatprep.mubr.msk.f32.mxu1 %vm1366_vm2, %v1365_v62 }
 0x2cf   : > { %v1152_v63 = vpop.f32.mrf.mxu1 }
 0x2d0   : > { %v577_v8 = vadd.f32 %v1152_v63, %v485_v7 }
 0x2d1   : > { %v571_v1 = vpop.f32.mrf.mxu1 }
 0x2d2   : > { %v572_v10 = vadd.f32 %v571_v1, %v480_v9 }
 0x2d3   : > { %v1155_v3 = vpop.f32.mrf.mxu1 }
 0x2d4   : > { %v587_v4 = vadd.f32 %v1155_v3, %v495_v0 }
 0x2d5   : > { %v581_v5 = vpop.f32.mrf.mxu1 }
 0x2d6   : > { %v582_v6 = vadd.f32 %v581_v5, %v490_v2  ;;  %1157 = vmatpush3.msra.mxu1 %v587_v4 }
 0x2d7   : > { %1158 = vmatprep.subr.mxu1 %v1365_v62 }
 0x2d8   : > { %1159 = vmatpush3.msra.mxu1 %v582_v6 }
 0x2d9   : > { %1160 = vmatprep.subr.mxu1 %v1365_v62 }
 0x2da   : > { %1161 = vmatpush3.msra.mxu1 %v577_v8 }
 0x2db   : > { %1162 = vmatprep.subr.mxu1 %v1365_v62 }
 0x2dc   : > { %1163 = vmatpush3.msra.mxu1 %v572_v10 }
 0x2dd   : > { %1165 = vmatmul.mubr.msk.f32.vlgmr.msra.gmra.mxu1 %vm375_vm1, %v1505_v19 }
 0x39d   : > { %v664_v12 = vpop.f32.mrf.mxu1 }
 0x39e   : > { %v665_v13 = vadd.f32 %v664_v12, %v594_v11 }
 0x39f   : > { %v1166_v14 = vpop.f32.mrf.mxu1 }
 0x3a0   : > { %668 = vxpose.xlu1.b32.start.end [1/1] (short) %v665_v13, 128 }
 0x41c   : > { %v684_v15 = vpop.trf.xlu1 }
 0x41d   : > { %701 = vst.msk [vmem:[%s1566_s3] sm:$0xff] %vm700_vm3, %v684_v15 }
 0x420   : > { %v685_v16 = vpop.trf.xlu1 }
 0x421   : > { %702 = vst.msk [vmem:[%s1566_s3 + $0x8] sm:$0xff] %vm700_vm3, %v685_v16 }
 0x424   : > { %v686_v17 = vpop.trf.xlu1 }
 0x425   : > { %703 = vst.msk [vmem:[%s1566_s3 + $0x10] sm:$0xff] %vm700_vm3, %v686_v17 }
 0x428   : > { %v687_v18 = vpop.trf.xlu1 }
 0x429   : > { %704 = vst.msk [vmem:[%s1566_s3 + $0x18] sm:$0xff] %vm700_vm3, %v687_v18 }
 0x42c   : > { %v688_v19 = vpop.trf.xlu1 }
 0x42d   : > { %705 = vst.msk [vmem:[%s1566_s3 + $0x20] sm:$0xff] %vm700_vm3, %v688_v19 }
 0x430   : > { %v689_v20 = vpop.trf.xlu1 }
 0x431   : > { %706 = vst.msk [vmem:[%s1566_s3 + $0x28] sm:$0xff] %vm700_vm3, %v689_v20 }
 0x434   : > { %v690_v21 = vpop.trf.xlu1 }
 0x435   : > { %707 = vst.msk [vmem:[%s1566_s3 + $0x30] sm:$0xff] %vm700_vm3, %v690_v21 }
 0x438   : > { %v691_v22 = vpop.trf.xlu1 }
 0x439   : > { %708 = vst.msk [vmem:[%s1566_s3 + $0x38] sm:$0xff] %vm700_vm3, %v691_v22 }
 0x43c   : > { %v692_v23 = vpop.trf.xlu1 }
 0x43d   : > { %709 = vst.msk [vmem:[%s1566_s3 + $0x40] sm:$0xff] %vm700_vm3, %v692_v23 }
 0x440   : > { %v693_v24 = vpop.trf.xlu1 }
 0x441   : > { %710 = vst.msk [vmem:[%s1566_s3 + $0x48] sm:$0xff] %vm700_vm3, %v693_v24 }
 0x444   : > { %v694_v25 = vpop.trf.xlu1 }
 0x445   : > { %711 = vst.msk [vmem:[%s1566_s3 + $0x50] sm:$0xff] %vm700_vm3, %v694_v25 }
 0x448   : > { %v695_v26 = vpop.trf.xlu1 }
 0x449   : > { %712 = vst.msk [vmem:[%s1566_s3 + $0x58] sm:$0xff] %vm700_vm3, %v695_v26 }
 0x44c   : > { %v696_v27 = vpop.trf.xlu1 }
 0x44d   : > { %713 = vst.msk [vmem:[%s1566_s3 + $0x60] sm:$0xff] %vm700_vm3, %v696_v27 }
 0x450   : > { %v697_v28 = vpop.trf.xlu1 }
 0x451   : > { %714 = vst.msk [vmem:[%s1566_s3 + $0x68] sm:$0xff] %vm700_vm3, %v697_v28 }
 0x454   : > { %v698_v29 = vpop.trf.xlu1 }
 0x455   : > { %715 = vst.msk [vmem:[%s1566_s3 + $0x70] sm:$0xff] %vm700_vm3, %v698_v29  ;;  %723 = sbr.rel (!%p1407_p4) target bundleno = 1155 (0x483), region = 32 }
 0x458   : > { %v699_v30 = vpop.trf.xlu1 }
 0x459   : > { %716 = vst.msk [vmem:[%s1566_s3 + $0x78] sm:$0xff] %vm700_vm3, %v699_v30 }
 0x45a   : > { %s1711_s9 = smov (!%p726_p8, %s725_s9), 16 }
 0x45b   : > { %s1031_s8 = sshll.u32 %s1711_s9, 7 }
 0x45c   : > { %p1034_p9 = scmp.eq.s32.totalorder %s1031_s8, 0 }
 0x45d   : > { %s1613_s11 = sshrl.u32 (!%p1034_p9), %s1711_s9, 4 }
 0x45e   : > { %734 = sbr.rel (%p1034_p9) target bundleno = 1155 (0x483), region = 36  ;;  %p1035_p10 = scmp.le.s32.totalorder (!%p1034_p9), %s1613_s11, 0 }
 0x463   : > { %949 = sbr.rel (%p1035_p10) target bundleno = 1138 (0x472), region = 112  ;;  %s1704_s12 = smov (!%p1035_p10), %s1607_s7 }
 0x464   : > { %s1705_s17 = smov (!%p1035_p10), %s1566_s3  ;;  %s1622_s18 = smov (!%p1035_p10), 0  }
 0x465   : > { %s1624_s14 = smov (!%p1035_p10), 0  }
 0x468 LB: >> { %v827_v31 = vld [vmem:[%s1338_s17] sm:$0xff]  ;;  %v829_v32 = vld [vmem:[%s1338_s17 + $0x8] sm:$0xff]  ;;  %v831_v33 = vld [vmem:[%s1338_s17 + $0x10] sm:$0xff]  ;;  %s859_s15 = sadd.s32 1, %s1342_s18  ;;  %s821_s14 = sadd.s32 1, %s1346_s14   ;;  %s1346_s14 = sphi %s1624_s14, %s821_s14   ;;  %s1342_s18 = sphi %s1622_s18, %s1706_s18   ;;  %s1338_s17 = sphi %s1705_s17, %s864_s17   ;;  %s1334_s12 = sphi %s1704_s12, %s865_s12  }
 0x469   : >> { %828 = vst [vmem:[%s1334_s12] sm:$0xff] %v827_v31  ;;  %830 = vst [vmem:[%s1334_s12 + $0x8] sm:$0xff] %v829_v32  ;;  %v833_v34 = vld [vmem:[%s1338_s17 + $0x18] sm:$0xff]  ;;  %v835_v35 = vld [vmem:[%s1338_s17 + $0x20] sm:$0xff]  ;;  %p860_p11 = scmp.ge.s32.totalorder %s859_s15, %s1613_s11  ;;  %p820_p12 = scmp.ge.s32.totalorder %s821_s14, %s1613_s11 }
 0x46a   : >> { %832 = vst [vmem:[%s1334_s12 + $0x10] sm:$0xff] %v831_v33  ;;  %v837_v36 = vld [vmem:[%s1338_s17 + $0x28] sm:$0xff]  ;;  %834 = vst [vmem:[%s1334_s12 + $0x18] sm:$0xff] %v833_v34  ;;  %v839_v37 = vld [vmem:[%s1338_s17 + $0x30] sm:$0xff] }
 0x46b   : >> { %836 = vst [vmem:[%s1334_s12 + $0x20] sm:$0xff] %v835_v35  ;;  %838 = vst [vmem:[%s1334_s12 + $0x28] sm:$0xff] %v837_v36  ;;  %v841_v38 = vld [vmem:[%s1338_s17 + $0x38] sm:$0xff]  ;;  %v843_v39 = vld [vmem:[%s1338_s17 + $0x40] sm:$0xff]  ;;  %s1713_s15 = smov (%p860_p11, %s859_s15), 0 }
 0x46c   : >> { %840 = vst [vmem:[%s1334_s12 + $0x30] sm:$0xff] %v839_v37  ;;  %842 = vst [vmem:[%s1334_s12 + $0x38] sm:$0xff] %v841_v38  ;;  %v845_v40 = vld [vmem:[%s1338_s17 + $0x48] sm:$0xff]  ;;  %v847_v41 = vld [vmem:[%s1338_s17 + $0x50] sm:$0xff]  ;;  %s1036_s19 = sshll.u32 %s1713_s15, 7  ;;  %s1706_s18 = smov %s1713_s15 }
 0x46d   : >> { %844 = vst [vmem:[%s1334_s12 + $0x40] sm:$0xff] %v843_v39  ;;  %v849_v42 = vld [vmem:[%s1338_s17 + $0x58] sm:$0xff]  ;;  %846 = vst [vmem:[%s1334_s12 + $0x48] sm:$0xff] %v845_v40  ;;  %v851_v43 = vld [vmem:[%s1338_s17 + $0x60] sm:$0xff]  ;;  %823 = sbr.rel (!%p820_p12) target bundleno = 1128 (0x468), region = 118 }
 0x46e   : >> { %848 = vst [vmem:[%s1334_s12 + $0x50] sm:$0xff] %v847_v41  ;;  %850 = vst [vmem:[%s1334_s12 + $0x58] sm:$0xff] %v849_v42  ;;  %v853_v44 = vld [vmem:[%s1338_s17 + $0x68] sm:$0xff]  ;;  %v855_v45 = vld [vmem:[%s1338_s17 + $0x70] sm:$0xff] }
 0x46f   : >> { %852 = vst [vmem:[%s1334_s12 + $0x60] sm:$0xff] %v851_v43  ;;  %854 = vst [vmem:[%s1334_s12 + $0x68] sm:$0xff] %v853_v44  ;;  %v857_v46 = vld [vmem:[%s1338_s17 + $0x78] sm:$0xff]  ;;  %s864_s17 = scalar_lea.vmem %s1566_s3, %s1036_s19 [#allocation2]  }
 0x470   : >> { %856 = vst [vmem:[%s1334_s12 + $0x70] sm:$0xff] %v855_v45  ;;  %858 = vst [vmem:[%s1334_s12 + $0x78] sm:$0xff] %v857_v46  ;;  %s865_s12 = scalar_lea.vmem %s1607_s7, %s1036_s19  }
 0x472 PF: > { %s1682_s20 = sand.u32 15, %s1711_s9   ;;  %s1047_s21 = sshll.u32 %s1613_s11, 7 }
 0x473   : > { %s870_s22 = scalar_lea.vmem %s1566_s3, %s1047_s21 [#allocation2]   ;;  %s872_s23 = scalar_lea.vmem %s1607_s7, %s1047_s21  }
 0x474   : > { %p1041_p13 = scmp.le.s32.totalorder %s1682_s20, 0 }
 0x475   : > { %s1348_s24 = smov (!%p1041_p13), %s872_s23   ;;  %s1352_s25 = smov (!%p1041_p13), %s870_s22  }
 0x476   : > { %963 = sbr.rel (%p1041_p13) target bundleno = 1155 (0x483), region = 123  ;;  %s1356_s26 = smov (!%p1041_p13), 0  }
 0x477   : > { %s1360_s27 = smov (!%p1041_p13), 0  }
 0x47b LB: >> { %v882_v47 = vld [vmem:[%s1354_s25] sm:$0xff]  ;;  %s884_s28 = sadd.s32 1, %s1358_s26  ;;  %s876_s27 = sadd.s32 1, %s1362_s27   ;;  %s1362_s27 = sphi %s1360_s27, %s876_s27   ;;  %s1358_s26 = sphi %s1356_s26, %s1357_s26   ;;  %s1354_s25 = sphi %s1352_s25, %s889_s25   ;;  %s1350_s24 = sphi %s1348_s24, %s890_s24  }
 0x47c   : >> { %883 = vst [vmem:[%s1350_s24] sm:$0xff] %v882_v47  ;;  %p885_p0 = scmp.ge.s32.totalorder %s884_s28, %s1682_s20  ;;  %p875_p1 = scmp.ge.s32.totalorder %s876_s27, %s1682_s20 }
 0x47e   : >> { %s1715_s28 = smov (%p885_p0, %s884_s28), 0  ;;  %878 = sbr.rel (!%p875_p1) target bundleno = 1147 (0x47b), region = 129 }
 0x47f   : >> { %s1042_s29 = sshll.u32 %s1715_s28, 3  ;;  %s1357_s26 = smov %s1715_s28  }
 0x480   : >> { %s889_s25 = scalar_lea.vmem %s870_s22, %s1042_s29 [#allocation2]   ;;  %s890_s24 = scalar_lea.vmem %s872_s23, %s1042_s29  }
 0x483 PF: > { %p9_p2 = scmp.ge.s32.totalorder %s1397_s13, 6   ;;  %s1707_s9 = smov %s1326_s10 }
 0x484   : > { %s1708_s10 = smov %s1405_s16  ;;  %s1709_s11 = smov %s1397_s13 }
 0x485   :  { %11 = sbr.rel (!%p9_p2) target bundleno = 2 (0x2), region = 140 }

</bundles_post_ra>
